<compile_context>
chip_gen: v7x
topology: tpu7x:2x2x1
jax: 0.10.0
libtpu: 0.0.40
codegen_flags: <defaults>
</compile_context>

<pallas_src>
import numpy as np
import jax
import jax.numpy as jnp
from jax.experimental import pallas as pl
from jax.experimental.pallas import tpu as pltpu


# ----------------------------------------------------------------------------
# Host-side parameter transforms: fold TF-SAME pad/crop, stride and kernel taps
# into constant matmul operators.  Activation layout: rows = ci*H + h,
# cols = n*W + w.  (Pure NumPy; runs once per (N, H, W) and is cached.)
# ----------------------------------------------------------------------------
def _conv_same_ops(w, b, H, W, N, stride):
    """Conv2dSamePad(k, stride) + Conv2d(Cin->Cout, k, stride)  (pre-ReLU).

    Returns L (k, Cout*OH, Cin*H), Csel (k, N*W, N*OW), brow (Cout*OH, 1), OH, OW
    such that   y = brow + sum_kw L[kw] @ (X @ Csel[kw]).
    """
    w = np.asarray(w, np.float32)
    b = np.asarray(b, np.float32)
    Cout, Cin, k, _ = w.shape
    OH = -(-H // stride)
    OW = -(-W // stride)
    pad_h = max((OH - 1) * stride + k - H, 0)
    pad_w = max((OW - 1) * stride + k - W, 0)
    pt, pleft = pad_h // 2, pad_w // 2   # TF puts the extra pad pixel bottom/right

    # Column (width) tap/stride/pad selection, block-diagonal over batch n.
    Csel = np.zeros((k, N * W, N * OW), np.float32)
    for kw in range(k):
        for ow in range(OW):
            ws = stride * ow + kw - pleft
            if 0 <= ws < W:
                for n in range(N):
                    Csel[kw, n * W + ws, n * OW + ow] = 1.0

    # Row (height) taps + channel mixing, with weights baked in.
    L = np.zeros((k, Cout * OH, Cin * H), np.float32)
    for kw in range(k):
        for kh in range(k):
            for oh in range(OH):
                hs = stride * oh + kh - pt
                if 0 <= hs < H:
                    for co in range(Cout):
                        for ci in range(Cin):
                            L[kw, co * OH + oh, ci * H + hs] = w[co, ci, kh, kw]

    brow = np.repeat(b, OH).reshape(Cout * OH, 1)
    return L, Csel, brow, OH, OW


def _deconv_same_ops(w, b, H, W, N, stride):
    """ConvTranspose2d(Cin->Cout, k, stride) + ConvTranspose2dSamePad (pre-ReLU).

    w has PyTorch ConvTranspose2d layout (Cin, Cout, k, k).  Output is
    (stride*H, stride*W).  Same return convention as _conv_same_ops.
    """
    w = np.asarray(w, np.float32)
    b = np.asarray(b, np.float32)
    Cin, Cout, k, _ = w.shape
    assert k >= stride, "ConvTranspose2dSamePad crop assumes kernel >= stride"
    OH, OW = H * stride, W * stride
    pt = (k - stride) // 2        # SAME crop: floor((k-s)/2) off top/left,
    pleft = (k - stride) // 2     # remainder off bottom/right.

    Csel = np.zeros((k, N * W, N * OW), np.float32)
    for kw in range(k):
        for ws in range(W):
            j = stride * ws + kw - pleft
            if 0 <= j < OW:
                for n in range(N):
                    Csel[kw, n * W + ws, n * OW + j] = 1.0

    L = np.zeros((k, Cout * OH, Cin * H), np.float32)
    for kw in range(k):
        for kh in range(k):
            for hs in range(H):
                i = stride * hs + kh - pt
                if 0 <= i < OH:
                    for co in range(Cout):
                        for ci in range(Cin):
                            L[kw, co * OH + i, ci * H + hs] = w[ci, co, kh, kw]

    brow = np.repeat(b, OH).reshape(Cout * OH, 1)
    return L, Csel, brow, OH, OW


# ----------------------------------------------------------------------------
# Fused Pallas kernel: the entire forward pass, all operands VMEM-resident.
# refs = [L_1, C_1, b_1, ..., L_nl, C_nl, b_nl, out_ref]
# Per layer:  h <- relu( bias + sum_t  L[t] @ (h @ C[t]) )     (t unrolled, static)
# ----------------------------------------------------------------------------
def _convae_fused_kernel(x_ref, *refs):
    o_ref = refs[-1]
    op_refs = refs[:-1]
    n_layers = len(op_refs) // 3

    h = x_ref[...]
    cdt = h.dtype                       # MXU input dtype (f32 default, bf16 optional)
    for li in range(n_layers):
        L_ref = op_refs[3 * li]
        C_ref = op_refs[3 * li + 1]
        b_ref = op_refs[3 * li + 2]
        k = L_ref.shape[0]
        acc = None
        for t in range(k):              # small static unroll over column taps
            z = jnp.dot(h, C_ref[t], preferred_element_type=jnp.float32)
            y = jnp.dot(L_ref[t], z.astype(cdt),
                        preferred_element_type=jnp.float32)
            acc = y if acc is None else acc + y
        h = jnp.maximum(acc + b_ref[...], 0.0).astype(cdt)   # bias + ReLU (f32 math)
    o_ref[...] = h.astype(o_ref.dtype)


# ----------------------------------------------------------------------------
# ConvAE module (deterministic synthetic parameters), single-pallas_call forward.
# ----------------------------------------------------------------------------
class ConvAEPallas:
    def __init__(self, channels, kernels, key, use_bf16=False):
        assert isinstance(channels, list) and isinstance(kernels, list)
        assert len(kernels) == len(channels) - 1
        self.use_bf16 = use_bf16
        self.enc_params = []
        self.dec_params = []
        # Encoder: Conv2dSamePad + Conv2d(channels[i-1] -> channels[i], k, stride=2) + ReLU
        for i in range(1, len(channels)):
            key, k1, k2 = jax.random.split(key, 3)
            cin, cout, kk = channels[i - 1], channels[i], kernels[i - 1]
            w = 0.1 * jax.random.normal(k1, (cout, cin, kk, kk), jnp.float32)
            b = 0.01 * jax.random.normal(k2, (cout,), jnp.float32)
            self.enc_params.append((w, b, kk))
        # Decoder: ConvTranspose2d(stride=2) + SAME crop + ReLU over reversed lists
        rch, rk = list(reversed(channels)), list(reversed(kernels))
        for i in range(len(rch) - 1):
            key, k1, k2 = jax.random.split(key, 3)
            cin, cout, kk = rch[i], rch[i + 1], rk[i]
            w = 0.1 * jax.random.normal(k1, (cin, cout, kk, kk), jnp.float32)
            b = 0.01 * jax.random.normal(k2, (cout,), jnp.float32)
            self.dec_params.append((w, b, kk))
        self._op_cache = {}

    def _operators(self, N, H, W):
        key = (N, H, W)
        if key in self._op_cache:
            return self._op_cache[key]
        layers = []
        h_, w_ = H, W
        for (w, b, _k) in self.enc_params:
            L, Cs, br, h_, w_ = _conv_same_ops(w, b, h_, w_, N, 2)
            layers.append((jnp.asarray(L), jnp.asarray(Cs), jnp.asarray(br)))
        for (w, b, _k) in self.dec_params:
            L, Cs, br, h_, w_ = _deconv_same_ops(w, b, h_, w_, N, 2)
            layers.append((jnp.asarray(L), jnp.asarray(Cs), jnp.asarray(br)))
        cf = int(self.dec_params[-1][0].shape[1])       # final channel count
        meta = (cf, h_, w_)
        self._op_cache[key] = (layers, meta)
        return layers, meta

    def __call__(self, x_nchw):
        # NOTE: parameters must be concrete (module constants); only x may be traced.
        N, Cin, H, W = x_nchw.shape
        layers, (cf, hf, wf) = self._operators(N, H, W)

        in_dt = jnp.bfloat16 if self.use_bf16 else jnp.float32
        # Boundary relayout NCHW -> (C*H, N*W); everything else happens in-kernel.
        x2d = jnp.transpose(x_nchw, (1, 2, 0, 3)).reshape(Cin * H, N * W).astype(in_dt)

        flat_ops = []
        for (L, Cs, br) in layers:
            flat_ops += [L.astype(in_dt), Cs.astype(in_dt), br]   # bias stays f32
        n_in = 1 + len(flat_ops)

        out2d = pl.pallas_call(
            _convae_fused_kernel,
            out_shape=jax.ShapeDtypeStruct((cf * hf, N * wf), jnp.float32),
            # Whole arrays staged into VMEM; no grid, no blocking, no scratch.
            in_specs=[pl.BlockSpec(memory_space=pltpu.MemorySpace.VMEM)] * n_in,
            out_specs=pl.BlockSpec(memory_space=pltpu.MemorySpace.VMEM),
            # Explicit (generous) budget; actual use is ~60 KiB, far under v7x's
            # 64 MiB physical VMEM.
            compiler_params=pltpu.CompilerParams(vmem_limit_bytes=16 * 1024 * 1024),
        )(x2d, *flat_ops)

        # Boundary relayout (C*H, N*W) -> NCHW on the tiny final output.
        return out2d.reshape(cf, hf, N, wf).transpose(2, 0, 1, 3)


# ----------------------------------------------------------------------------
# Pure-XLA reference of the same PyTorch graph (numerical validation only).
# ----------------------------------------------------------------------------
def tf_same_pad(x, k, stride):
    H, W = x.shape[-2], x.shape[-1]
    out_h = -(-H // stride)
    out_w = -(-W // stride)
    pad_h = max((out_h - 1) * stride + k - H, 0)
    pad_w = max((out_w - 1) * stride + k - W, 0)
    pt, pb = pad_h // 2, pad_h - pad_h // 2
    pleft, pright = pad_w // 2, pad_w - pad_w // 2
    cfg = [(0, 0)] * (x.ndim - 2) + [(pt, pb), (pleft, pright)]
    return jnp.pad(x, cfg)


def _ref_forward(x, enc_params, dec_params):
    h = x
    for (w, b, k) in enc_params:
        hp = tf_same_pad(h, k, 2)
        h = jax.lax.conv_general_dilated(
            hp, w, window_strides=(2, 2), padding="VALID",
            dimension_numbers=("NCHW", "OIHW", "NCHW"),
            precision=jax.lax.Precision.HIGHEST)
        h = jax.nn.relu(h + b.reshape(1, -1, 1, 1))
    for (w, b, k) in dec_params:
        w_conv = jnp.flip(w, (2, 3)).transpose(1, 0, 2, 3)      # (Cout, Cin, k, k)
        y = jax.lax.conv_general_dilated(
            h, w_conv, window_strides=(1, 1),
            padding=((k - 1, k - 1), (k - 1, k - 1)), lhs_dilation=(2, 2),
            dimension_numbers=("NCHW", "OIHW", "NCHW"),
            precision=jax.lax.Precision.HIGHEST)
        y = y + b.reshape(1, -1, 1, 1)
        pad = k - 2
        pt, pb = pad // 2, pad - pad // 2
        Hn, Wn = y.shape[2], y.shape[3]
        h = jax.nn.relu(y[:, :, pt:Hn - pb, pt:Wn - pb])
    return h


def _check_config(channels, kernels, x, key):
    model = ConvAEPallas(channels, kernels, key, use_bf16=False)
    fwd = jax.jit(lambda inp: model(inp))        # ONE pallas_call + boundary glue
    y = jax.block_until_ready(fwd(x))
    assert y.shape == x.shape, (y.shape, x.shape)
    assert y.dtype == jnp.float32
    ref = jax.block_until_ready(
        jax.jit(lambda inp: _ref_forward(inp, model.enc_params,
                                         model.dec_params))(x))
    err = float(jnp.max(jnp.abs(y - ref)))
    assert jnp.allclose(y, ref, atol=5e-2, rtol=5e-2), err
    return err


if __name__ == "__main__":
    key = jax.random.PRNGKey(0)
    k_x, k_m1, k_m2 = jax.random.split(key, 3)

    # Grayscale 16x16 images, batch 2: channels = [1, 4, 8], kernels = [3, 3]
    # (two encoder conv layers / two decoder transposed-conv layers).
    x = jax.random.normal(k_x, (2, 1, 16, 16), jnp.float32)
    _check_config([1, 4, 8], [3, 3], x, k_m1)

    # Second config with k != 3 (asymmetric TF-SAME pad/crop, k - stride odd)
    # to exercise the general pad/crop operator construction.
    _check_config([1, 4, 8], [5, 3], x, k_m2)

    print("KERNEL_OK")
</pallas_src>

<mosaic_0001>
module attributes {stable_mosaic.version = 11 : i64} {
  func.func @_convae_fused_kernel(%arg0: memref<16x32xf32, #tpu.memory_space<vmem>>, %arg1: memref<3x32x16xf32, #tpu.memory_space<vmem>>, %arg2: memref<3x32x16xf32, #tpu.memory_space<vmem>>, %arg3: memref<32x1xf32, #tpu.memory_space<vmem>>, %arg4: memref<3x32x32xf32, #tpu.memory_space<vmem>>, %arg5: memref<3x16x8xf32, #tpu.memory_space<vmem>>, %arg6: memref<32x1xf32, #tpu.memory_space<vmem>>, %arg7: memref<3x32x32xf32, #tpu.memory_space<vmem>>, %arg8: memref<3x8x16xf32, #tpu.memory_space<vmem>>, %arg9: memref<32x1xf32, #tpu.memory_space<vmem>>, %arg10: memref<3x16x32xf32, #tpu.memory_space<vmem>>, %arg11: memref<3x16x32xf32, #tpu.memory_space<vmem>>, %arg12: memref<16x1xf32, #tpu.memory_space<vmem>>, %arg13: memref<16x32xf32, #tpu.memory_space<vmem>>) attributes {dimension_semantics = [], scalar_prefetch = 0 : i64, scratch_operands = 0 : i64, tpu.core_type = #tpu.core_type<tc>} {
    %c0 = arith.constant 0 : index
    %c0_0 = arith.constant 0 : index
    %0 = vector.load %arg0[%c0, %c0_0] : memref<16x32xf32, #tpu.memory_space<vmem>>, vector<16x32xf32>
    %c0_1 = arith.constant 0 : index
    %c0_2 = arith.constant 0 : index
    %c0_3 = arith.constant 0 : index
    %1 = vector.load %arg2[%c0_1, %c0_2, %c0_3] : memref<3x32x16xf32, #tpu.memory_space<vmem>>, vector<1x32x16xf32>
    %2 = vector.shape_cast %1 : vector<1x32x16xf32> to vector<32x16xf32>
    %cst = arith.constant dense<0.000000e+00> : vector<16x16xf32>
    %3 = tpu.matmul %0, %2, %cst {dimension_numbers = #tpu.dot_dimension_numbers<[1], [0], [0], [1], [0, 0, 1, 1], [], []>} : vector<16x32xf32>, vector<32x16xf32>, vector<16x16xf32> -> vector<16x16xf32>
    %c0_4 = arith.constant 0 : index
    %c0_5 = arith.constant 0 : index
    %c0_6 = arith.constant 0 : index
    %4 = vector.load %arg1[%c0_4, %c0_5, %c0_6] : memref<3x32x16xf32, #tpu.memory_space<vmem>>, vector<1x32x16xf32>
    %5 = vector.shape_cast %4 : vector<1x32x16xf32> to vector<32x16xf32>
    %cst_7 = arith.constant dense<0.000000e+00> : vector<32x16xf32>
    %6 = tpu.matmul %5, %3, %cst_7 {dimension_numbers = #tpu.dot_dimension_numbers<[1], [0], [0], [1], [0, 0, 1, 1], [], []>} : vector<32x16xf32>, vector<16x16xf32>, vector<32x16xf32> -> vector<32x16xf32>
    %c1 = arith.constant 1 : index
    %c0_8 = arith.constant 0 : index
    %c0_9 = arith.constant 0 : index
    %7 = vector.load %arg2[%c1, %c0_8, %c0_9] : memref<3x32x16xf32, #tpu.memory_space<vmem>>, vector<1x32x16xf32>
    %8 = vector.shape_cast %7 : vector<1x32x16xf32> to vector<32x16xf32>
    %cst_10 = arith.constant dense<0.000000e+00> : vector<16x16xf32>
    %9 = tpu.matmul %0, %8, %cst_10 {dimension_numbers = #tpu.dot_dimension_numbers<[1], [0], [0], [1], [0, 0, 1, 1], [], []>} : vector<16x32xf32>, vector<32x16xf32>, vector<16x16xf32> -> vector<16x16xf32>
    %c1_11 = arith.constant 1 : index
    %c0_12 = arith.constant 0 : index
    %c0_13 = arith.constant 0 : index
    %10 = vector.load %arg1[%c1_11, %c0_12, %c0_13] : memref<3x32x16xf32, #tpu.memory_space<vmem>>, vector<1x32x16xf32>
    %11 = vector.shape_cast %10 : vector<1x32x16xf32> to vector<32x16xf32>
    %cst_14 = arith.constant dense<0.000000e+00> : vector<32x16xf32>
    %12 = tpu.matmul %11, %9, %cst_14 {dimension_numbers = #tpu.dot_dimension_numbers<[1], [0], [0], [1], [0, 0, 1, 1], [], []>} : vector<32x16xf32>, vector<16x16xf32>, vector<32x16xf32> -> vector<32x16xf32>
    %13 = arith.addf %6, %12 : vector<32x16xf32>
    %c2 = arith.constant 2 : index
    %c0_15 = arith.constant 0 : index
    %c0_16 = arith.constant 0 : index
    %14 = vector.load %arg2[%c2, %c0_15, %c0_16] : memref<3x32x16xf32, #tpu.memory_space<vmem>>, vector<1x32x16xf32>
    %15 = vector.shape_cast %14 : vector<1x32x16xf32> to vector<32x16xf32>
    %cst_17 = arith.constant dense<0.000000e+00> : vector<16x16xf32>
    %16 = tpu.matmul %0, %15, %cst_17 {dimension_numbers = #tpu.dot_dimension_numbers<[1], [0], [0], [1], [0, 0, 1, 1], [], []>} : vector<16x32xf32>, vector<32x16xf32>, vector<16x16xf32> -> vector<16x16xf32>
    %c2_18 = arith.constant 2 : index
    %c0_19 = arith.constant 0 : index
    %c0_20 = arith.constant 0 : index
    %17 = vector.load %arg1[%c2_18, %c0_19, %c0_20] : memref<3x32x16xf32, #tpu.memory_space<vmem>>, vector<1x32x16xf32>
    %18 = vector.shape_cast %17 : vector<1x32x16xf32> to vector<32x16xf32>
    %cst_21 = arith.constant dense<0.000000e+00> : vector<32x16xf32>
    %19 = tpu.matmul %18, %16, %cst_21 {dimension_numbers = #tpu.dot_dimension_numbers<[1], [0], [0], [1], [0, 0, 1, 1], [], []>} : vector<32x16xf32>, vector<16x16xf32>, vector<32x16xf32> -> vector<32x16xf32>
    %20 = arith.addf %13, %19 : vector<32x16xf32>
    %c0_22 = arith.constant 0 : index
    %c0_23 = arith.constant 0 : index
    %21 = vector.load %arg3[%c0_22, %c0_23] : memref<32x1xf32, #tpu.memory_space<vmem>>, vector<32x1xf32>
    %22 = vector.broadcast %21 : vector<32x1xf32> to vector<32x16xf32>
    %23 = arith.addf %20, %22 : vector<32x16xf32>
    %cst_24 = arith.constant 0.000000e+00 : f32
    %24 = vector.broadcast %cst_24 : f32 to vector<32x16xf32>
    %25 = arith.maximumf %23, %24 : vector<32x16xf32>
    %c0_25 = arith.constant 0 : index
    %c0_26 = arith.constant 0 : index
    %c0_27 = arith.constant 0 : index
    %26 = vector.load %arg5[%c0_25, %c0_26, %c0_27] : memref<3x16x8xf32, #tpu.memory_space<vmem>>, vector<1x16x8xf32>
    %27 = vector.shape_cast %26 : vector<1x16x8xf32> to vector<16x8xf32>
    %cst_28 = arith.constant dense<0.000000e+00> : vector<32x8xf32>
    %28 = tpu.matmul %25, %27, %cst_28 {dimension_numbers = #tpu.dot_dimension_numbers<[1], [0], [0], [1], [0, 0, 1, 1], [], []>} : vector<32x16xf32>, vector<16x8xf32>, vector<32x8xf32> -> vector<32x8xf32>
    %c0_29 = arith.constant 0 : index
    %c0_30 = arith.constant 0 : index
    %c0_31 = arith.constant 0 : index
    %29 = vector.load %arg4[%c0_29, %c0_30, %c0_31] : memref<3x32x32xf32, #tpu.memory_space<vmem>>, vector<1x32x32xf32>
    %30 = vector.shape_cast %29 : vector<1x32x32xf32> to vector<32x32xf32>
    %cst_32 = arith.constant dense<0.000000e+00> : vector<32x8xf32>
    %31 = tpu.matmul %30, %28, %cst_32 {dimension_numbers = #tpu.dot_dimension_numbers<[1], [0], [0], [1], [0, 0, 1, 1], [], []>} : vector<32x32xf32>, vector<32x8xf32>, vector<32x8xf32> -> vector<32x8xf32>
    %c1_33 = arith.constant 1 : index
    %c0_34 = arith.constant 0 : index
    %c0_35 = arith.constant 0 : index
    %32 = vector.load %arg5[%c1_33, %c0_34, %c0_35] : memref<3x16x8xf32, #tpu.memory_space<vmem>>, vector<1x16x8xf32>
    %33 = vector.shape_cast %32 : vector<1x16x8xf32> to vector<16x8xf32>
    %cst_36 = arith.constant dense<0.000000e+00> : vector<32x8xf32>
    %34 = tpu.matmul %25, %33, %cst_36 {dimension_numbers = #tpu.dot_dimension_numbers<[1], [0], [0], [1], [0, 0, 1, 1], [], []>} : vector<32x16xf32>, vector<16x8xf32>, vector<32x8xf32> -> vector<32x8xf32>
    %c1_37 = arith.constant 1 : index
    %c0_38 = arith.constant 0 : index
    %c0_39 = arith.constant 0 : index
    %35 = vector.load %arg4[%c1_37, %c0_38, %c0_39] : memref<3x32x32xf32, #tpu.memory_space<vmem>>, vector<1x32x32xf32>
    %36 = vector.shape_cast %35 : vector<1x32x32xf32> to vector<32x32xf32>
    %cst_40 = arith.constant dense<0.000000e+00> : vector<32x8xf32>
    %37 = tpu.matmul %36, %34, %cst_40 {dimension_numbers = #tpu.dot_dimension_numbers<[1], [0], [0], [1], [0, 0, 1, 1], [], []>} : vector<32x32xf32>, vector<32x8xf32>, vector<32x8xf32> -> vector<32x8xf32>
    %38 = arith.addf %31, %37 : vector<32x8xf32>
    %c2_41 = arith.constant 2 : index
    %c0_42 = arith.constant 0 : index
    %c0_43 = arith.constant 0 : index
    %39 = vector.load %arg5[%c2_41, %c0_42, %c0_43] : memref<3x16x8xf32, #tpu.memory_space<vmem>>, vector<1x16x8xf32>
    %40 = vector.shape_cast %39 : vector<1x16x8xf32> to vector<16x8xf32>
    %cst_44 = arith.constant dense<0.000000e+00> : vector<32x8xf32>
    %41 = tpu.matmul %25, %40, %cst_44 {dimension_numbers = #tpu.dot_dimension_numbers<[1], [0], [0], [1], [0, 0, 1, 1], [], []>} : vector<32x16xf32>, vector<16x8xf32>, vector<32x8xf32> -> vector<32x8xf32>
    %c2_45 = arith.constant 2 : index
    %c0_46 = arith.constant 0 : index
    %c0_47 = arith.constant 0 : index
    %42 = vector.load %arg4[%c2_45, %c0_46, %c0_47] : memref<3x32x32xf32, #tpu.memory_space<vmem>>, vector<1x32x32xf32>
    %43 = vector.shape_cast %42 : vector<1x32x32xf32> to vector<32x32xf32>
    %cst_48 = arith.constant dense<0.000000e+00> : vector<32x8xf32>
    %44 = tpu.matmul %43, %41, %cst_48 {dimension_numbers = #tpu.dot_dimension_numbers<[1], [0], [0], [1], [0, 0, 1, 1], [], []>} : vector<32x32xf32>, vector<32x8xf32>, vector<32x8xf32> -> vector<32x8xf32>
    %45 = arith.addf %38, %44 : vector<32x8xf32>
    %c0_49 = arith.constant 0 : index
    %c0_50 = arith.constant 0 : index
    %46 = vector.load %arg6[%c0_49, %c0_50] : memref<32x1xf32, #tpu.memory_space<vmem>>, vector<32x1xf32>
    %47 = vector.broadcast %46 : vector<32x1xf32> to vector<32x8xf32>
    %48 = arith.addf %45, %47 : vector<32x8xf32>
    %cst_51 = arith.constant 0.000000e+00 : f32
    %49 = vector.broadcast %cst_51 : f32 to vector<32x8xf32>
    %50 = arith.maximumf %48, %49 : vector<32x8xf32>
    %c0_52 = arith.constant 0 : index
    %c0_53 = arith.constant 0 : index
    %c0_54 = arith.constant 0 : index
    %51 = vector.load %arg8[%c0_52, %c0_53, %c0_54] : memref<3x8x16xf32, #tpu.memory_space<vmem>>, vector<1x8x16xf32>
    %52 = vector.shape_cast %51 : vector<1x8x16xf32> to vector<8x16xf32>
    %cst_55 = arith.constant dense<0.000000e+00> : vector<32x16xf32>
    %53 = tpu.matmul %50, %52, %cst_55 {dimension_numbers = #tpu.dot_dimension_numbers<[1], [0], [0], [1], [0, 0, 1, 1], [], []>} : vector<32x8xf32>, vector<8x16xf32>, vector<32x16xf32> -> vector<32x16xf32>
    %c0_56 = arith.constant 0 : index
    %c0_57 = arith.constant 0 : index
    %c0_58 = arith.constant 0 : index
    %54 = vector.load %arg7[%c0_56, %c0_57, %c0_58] : memref<3x32x32xf32, #tpu.memory_space<vmem>>, vector<1x32x32xf32>
    %55 = vector.shape_cast %54 : vector<1x32x32xf32> to vector<32x32xf32>
    %cst_59 = arith.constant dense<0.000000e+00> : vector<32x16xf32>
    %56 = tpu.matmul %55, %53, %cst_59 {dimension_numbers = #tpu.dot_dimension_numbers<[1], [0], [0], [1], [0, 0, 1, 1], [], []>} : vector<32x32xf32>, vector<32x16xf32>, vector<32x16xf32> -> vector<32x16xf32>
    %c1_60 = arith.constant 1 : index
    %c0_61 = arith.constant 0 : index
    %c0_62 = arith.constant 0 : index
    %57 = vector.load %arg8[%c1_60, %c0_61, %c0_62] : memref<3x8x16xf32, #tpu.memory_space<vmem>>, vector<1x8x16xf32>
    %58 = vector.shape_cast %57 : vector<1x8x16xf32> to vector<8x16xf32>
    %cst_63 = arith.constant dense<0.000000e+00> : vector<32x16xf32>
    %59 = tpu.matmul %50, %58, %cst_63 {dimension_numbers = #tpu.dot_dimension_numbers<[1], [0], [0], [1], [0, 0, 1, 1], [], []>} : vector<32x8xf32>, vector<8x16xf32>, vector<32x16xf32> -> vector<32x16xf32>
    %c1_64 = arith.constant 1 : index
    %c0_65 = arith.constant 0 : index
    %c0_66 = arith.constant 0 : index
    %60 = vector.load %arg7[%c1_64, %c0_65, %c0_66] : memref<3x32x32xf32, #tpu.memory_space<vmem>>, vector<1x32x32xf32>
    %61 = vector.shape_cast %60 : vector<1x32x32xf32> to vector<32x32xf32>
    %cst_67 = arith.constant dense<0.000000e+00> : vector<32x16xf32>
    %62 = tpu.matmul %61, %59, %cst_67 {dimension_numbers = #tpu.dot_dimension_numbers<[1], [0], [0], [1], [0, 0, 1, 1], [], []>} : vector<32x32xf32>, vector<32x16xf32>, vector<32x16xf32> -> vector<32x16xf32>
    %63 = arith.addf %56, %62 : vector<32x16xf32>
    %c2_68 = arith.constant 2 : index
    %c0_69 = arith.constant 0 : index
    %c0_70 = arith.constant 0 : index
    %64 = vector.load %arg8[%c2_68, %c0_69, %c0_70] : memref<3x8x16xf32, #tpu.memory_space<vmem>>, vector<1x8x16xf32>
    %65 = vector.shape_cast %64 : vector<1x8x16xf32> to vector<8x16xf32>
    %cst_71 = arith.constant dense<0.000000e+00> : vector<32x16xf32>
    %66 = tpu.matmul %50, %65, %cst_71 {dimension_numbers = #tpu.dot_dimension_numbers<[1], [0], [0], [1], [0, 0, 1, 1], [], []>} : vector<32x8xf32>, vector<8x16xf32>, vector<32x16xf32> -> vector<32x16xf32>
    %c2_72 = arith.constant 2 : index
    %c0_73 = arith.constant 0 : index
    %c0_74 = arith.constant 0 : index
    %67 = vector.load %arg7[%c2_72, %c0_73, %c0_74] : memref<3x32x32xf32, #tpu.memory_space<vmem>>, vector<1x32x32xf32>
    %68 = vector.shape_cast %67 : vector<1x32x32xf32> to vector<32x32xf32>
    %cst_75 = arith.constant dense<0.000000e+00> : vector<32x16xf32>
    %69 = tpu.matmul %68, %66, %cst_75 {dimension_numbers = #tpu.dot_dimension_numbers<[1], [0], [0], [1], [0, 0, 1, 1], [], []>} : vector<32x32xf32>, vector<32x16xf32>, vector<32x16xf32> -> vector<32x16xf32>
    %70 = arith.addf %63, %69 : vector<32x16xf32>
    %c0_76 = arith.constant 0 : index
    %c0_77 = arith.constant 0 : index
    %71 = vector.load %arg9[%c0_76, %c0_77] : memref<32x1xf32, #tpu.memory_space<vmem>>, vector<32x1xf32>
    %72 = vector.broadcast %71 : vector<32x1xf32> to vector<32x16xf32>
    %73 = arith.addf %70, %72 : vector<32x16xf32>
    %cst_78 = arith.constant 0.000000e+00 : f32
    %74 = vector.broadcast %cst_78 : f32 to vector<32x16xf32>
    %75 = arith.maximumf %73, %74 : vector<32x16xf32>
    %c0_79 = arith.constant 0 : index
    %c0_80 = arith.constant 0 : index
    %c0_81 = arith.constant 0 : index
    %76 = vector.load %arg11[%c0_79, %c0_80, %c0_81] : memref<3x16x32xf32, #tpu.memory_space<vmem>>, vector<1x16x32xf32>
    %77 = vector.shape_cast %76 : vector<1x16x32xf32> to vector<16x32xf32>
    %cst_82 = arith.constant dense<0.000000e+00> : vector<32x32xf32>
    %78 = tpu.matmul %75, %77, %cst_82 {dimension_numbers = #tpu.dot_dimension_numbers<[1], [0], [0], [1], [0, 0, 1, 1], [], []>} : vector<32x16xf32>, vector<16x32xf32>, vector<32x32xf32> -> vector<32x32xf32>
    %c0_83 = arith.constant 0 : index
    %c0_84 = arith.constant 0 : index
    %c0_85 = arith.constant 0 : index
    %79 = vector.load %arg10[%c0_83, %c0_84, %c0_85] : memref<3x16x32xf32, #tpu.memory_space<vmem>>, vector<1x16x32xf32>
    %80 = vector.shape_cast %79 : vector<1x16x32xf32> to vector<16x32xf32>
    %cst_86 = arith.constant dense<0.000000e+00> : vector<16x32xf32>
    %81 = tpu.matmul %80, %78, %cst_86 {dimension_numbers = #tpu.dot_dimension_numbers<[1], [0], [0], [1], [0, 0, 1, 1], [], []>} : vector<16x32xf32>, vector<32x32xf32>, vector<16x32xf32> -> vector<16x32xf32>
    %c1_87 = arith.constant 1 : index
    %c0_88 = arith.constant 0 : index
    %c0_89 = arith.constant 0 : index
    %82 = vector.load %arg11[%c1_87, %c0_88, %c0_89] : memref<3x16x32xf32, #tpu.memory_space<vmem>>, vector<1x16x32xf32>
    %83 = vector.shape_cast %82 : vector<1x16x32xf32> to vector<16x32xf32>
    %cst_90 = arith.constant dense<0.000000e+00> : vector<32x32xf32>
    %84 = tpu.matmul %75, %83, %cst_90 {dimension_numbers = #tpu.dot_dimension_numbers<[1], [0], [0], [1], [0, 0, 1, 1], [], []>} : vector<32x16xf32>, vector<16x32xf32>, vector<32x32xf32> -> vector<32x32xf32>
    %c1_91 = arith.constant 1 : index
    %c0_92 = arith.constant 0 : index
    %c0_93 = arith.constant 0 : index
    %85 = vector.load %arg10[%c1_91, %c0_92, %c0_93] : memref<3x16x32xf32, #tpu.memory_space<vmem>>, vector<1x16x32xf32>
    %86 = vector.shape_cast %85 : vector<1x16x32xf32> to vector<16x32xf32>
    %cst_94 = arith.constant dense<0.000000e+00> : vector<16x32xf32>
    %87 = tpu.matmul %86, %84, %cst_94 {dimension_numbers = #tpu.dot_dimension_numbers<[1], [0], [0], [1], [0, 0, 1, 1], [], []>} : vector<16x32xf32>, vector<32x32xf32>, vector<16x32xf32> -> vector<16x32xf32>
    %88 = arith.addf %81, %87 : vector<16x32xf32>
    %c2_95 = arith.constant 2 : index
    %c0_96 = arith.constant 0 : index
    %c0_97 = arith.constant 0 : index
    %89 = vector.load %arg11[%c2_95, %c0_96, %c0_97] : memref<3x16x32xf32, #tpu.memory_space<vmem>>, vector<1x16x32xf32>
    %90 = vector.shape_cast %89 : vector<1x16x32xf32> to vector<16x32xf32>
    %cst_98 = arith.constant dense<0.000000e+00> : vector<32x32xf32>
    %91 = tpu.matmul %75, %90, %cst_98 {dimension_numbers = #tpu.dot_dimension_numbers<[1], [0], [0], [1], [0, 0, 1, 1], [], []>} : vector<32x16xf32>, vector<16x32xf32>, vector<32x32xf32> -> vector<32x32xf32>
    %c2_99 = arith.constant 2 : index
    %c0_100 = arith.constant 0 : index
    %c0_101 = arith.constant 0 : index
    %92 = vector.load %arg10[%c2_99, %c0_100, %c0_101] : memref<3x16x32xf32, #tpu.memory_space<vmem>>, vector<1x16x32xf32>
    %93 = vector.shape_cast %92 : vector<1x16x32xf32> to vector<16x32xf32>
    %cst_102 = arith.constant dense<0.000000e+00> : vector<16x32xf32>
    %94 = tpu.matmul %93, %91, %cst_102 {dimension_numbers = #tpu.dot_dimension_numbers<[1], [0], [0], [1], [0, 0, 1, 1], [], []>} : vector<16x32xf32>, vector<32x32xf32>, vector<16x32xf32> -> vector<16x32xf32>
    %95 = arith.addf %88, %94 : vector<16x32xf32>
    %c0_103 = arith.constant 0 : index
    %c0_104 = arith.constant 0 : index
    %96 = vector.load %arg12[%c0_103, %c0_104] : memref<16x1xf32, #tpu.memory_space<vmem>>, vector<16x1xf32>
    %97 = vector.broadcast %96 : vector<16x1xf32> to vector<16x32xf32>
    %98 = arith.addf %95, %97 : vector<16x32xf32>
    %cst_105 = arith.constant 0.000000e+00 : f32
    %99 = vector.broadcast %cst_105 : f32 to vector<16x32xf32>
    %100 = arith.maximumf %98, %99 : vector<16x32xf32>
    %c0_106 = arith.constant 0 : index
    %c0_107 = arith.constant 0 : index
    %101 = vector.load %arg13[%c0_106, %c0_107] : memref<16x32xf32, #tpu.memory_space<vmem>>, vector<16x32xf32>
    tpu.vector_store %arg13[%c0_106, %c0_107], %100 {strides = array<i32>} : memref<16x32xf32, #tpu.memory_space<vmem>>, vector<16x32xf32>,
    return
  }
}

</mosaic_0001>

<bundles_post_ra>
// kernel: _lambda_.1
= control target key start
LH: loop header
LB: loop body
LE: loop exit
PB: predicated region body
PF: predicated region fallthrough
CT: control target
= control target key end

     0   :  { %18 = vsyncpa [#allocation3], 0  ;;  %s3839_s0 = inlined_call_operand.vmem [shape: f32[16,32], index: 0, kind: input, shape index: {}]   ;;  %s3840_s1 = inlined_call_operand.hbm [shape: f32[3,32,16], index: 1, kind: input, shape index: {}]   ;;  %s3841_s2 = inlined_call_operand.hbm [shape: f32[3,32,16], index: 2, kind: input, shape index: {}]   ;;  %s3842_s3 = inlined_call_operand.hbm [shape: f32[32,1], index: 3, kind: input, shape index: {}]   ;;  %s3843_s4 = inlined_call_operand.hbm [shape: f32[3,32,32], index: 4, kind: input, shape index: {}]   ;;  %s3844_s5 = inlined_call_operand.hbm [shape: f32[3,16,8], index: 5, kind: input, shape index: {}]   ;;  %s3845_s6 = inlined_call_operand.hbm [shape: f32[32,1], index: 6, kind: input, shape index: {}]   ;;  %s3846_s7 = inlined_call_operand.vmem [shape: f32[3,32,32], index: 7, kind: input, shape index: {}]   ;;  %s3847_s8 = inlined_call_operand.hbm [shape: f32[3,8,16], index: 8, kind: input, shape index: {}]   ;;  %s3848_s9 = inlined_call_operand.hbm [shape: f32[32,1], index: 9, kind: input, shape index: {}]   ;;  %s3849_s10 = inlined_call_operand.hbm [shape: f32[3,16,32], index: 10, kind: input, shape index: {}]   ;;  %s3850_s11 = inlined_call_operand.vmem [shape: f32[3,16,32], index: 11, kind: input, shape index: {}]   ;;  %s3851_s12 = inlined_call_operand.vmem [shape: f32[16,1], index: 12, kind: input, shape index: {}]   ;;  %s3852_s13 = inlined_call_operand.vmem [shape: f32[16,32], index: 13, kind: output, shape index: {}]  }
   0x1   :  { %19 = vsyncpa [#allocation5], 0 }
   0x2   :  { %20 = vsyncpa [#allocation8], 0 }
   0x3   :  { %21 = vsyncpa [#allocation11], 0 }
   0x4   :  { %22 = vsyncpa [#allocation14], 0  ;;  %s3436_s25 = smov [#allocation4]   ;;  %s3437_s27 = smov [#allocation7]  }
   0x5   :  { %s42_s26 = sshll.u32 %s3436_s25, 4  ;;  %s66_s28 = sshll.u32 %s3437_s27, 4  ;;  %s43_s26 = int_to_ptr.vmem [resolvable:$true] %s42_s26  ;;  %s3518_s28 = int_to_ptr.vmem [resolvable:$true] %s66_s28 }
   0x6   :  { %s3228_s14 = scalar_lea.hbm %s3841_s2, 1536 }
   0x7   :  { %p3229_p0 = scmp.ne.s32.totalorder %s3841_s2, %s3228_s14  ;;  %p3232_p1 = scmp.lt.u32.totalorder %s3228_s14, %s3841_s2 }
   0x9   :  { %p3234_p2 = pnand %p3232_p1, %p3229_p0 }
   0xb   :  { %3237 = shalt.err (!%p3234_p2)
}
   0xc   :  { %s3238_s19 = scalar_lea.vmem %s43_s26, 1536  ;;  %p3243_p4 = scmp.lt.s32.totalorder %s43_s26, %s43_s26 }
   0xd   :  { %p3239_p3 = scmp.ne.s32.totalorder %s43_s26, %s3238_s19  ;;  %p3244_p5 = scmp.lt.s32.totalorder %s3238_s19, %s3238_s19 }
   0xf   :  { %p3245_p6 = por %p3244_p5, %p3243_p4 }
  0x11   :  { %p3246_p7 = pnand %p3245_p6, %p3239_p3 }
  0x13   :  { %3249 = shalt.err (!%p3246_p7)
}
  0x14   :  { %s3438_s20 = smov 128   ;;  %s3439_s21 = smov 8  }
  0x15   :  { %48 = dma.hbm_to_vmem [thread:$0]  %s3841_s2, 1536, %s43_s26, [#allocation5], %s3438_s20, %s3438_s20, %s3439_s21  }
  0x16   :  { %s3250_s27 = scalar_lea.hbm %s3843_s4, 1536 }
  0x17   :  { %p3251_p8 = scmp.ne.s32.totalorder %s3843_s4, %s3250_s27  ;;  %p3254_p9 = scmp.lt.u32.totalorder %s3250_s27, %s3843_s4 }
  0x19   :  { %p3256_p10 = pnand %p3254_p9, %p3251_p8 }
  0x1b   :  { %3259 = shalt.err (!%p3256_p10)
}
  0x1c   :  { %s3260_s16 = scalar_lea.vmem %s3518_s28, 1536  ;;  %p3265_p12 = scmp.lt.s32.totalorder %s3518_s28, %s3518_s28 }
  0x1d   :  { %p3261_p11 = scmp.ne.s32.totalorder %s3518_s28, %s3260_s16  ;;  %p3266_p13 = scmp.lt.s32.totalorder %s3260_s16, %s3260_s16 }
  0x1f   :  { %p3267_p0 = por %p3266_p13, %p3265_p12 }
  0x21   :  { %p3268_p1 = pnand %p3267_p0, %p3261_p11 }
  0x23   :  { %3271 = shalt.err (!%p3268_p1)
}
  0x24   :  { %72 = dma.hbm_to_vmem [thread:$0]  %s3843_s4, 1536, %s3518_s28, [#allocation8], %s3438_s20, %s3438_s20, %s3439_s21  }
  0x25   :  { %s3440_s17 = smov [#allocation10]   ;;  %s3441_s19 = smov [#allocation13]  }
  0x26   :  { %s90_s18 = sshll.u32 %s3440_s17, 4  ;;  %s116_s22 = sshll.u32 %s3441_s19, 4  ;;  %s91_s18 = int_to_ptr.vmem [resolvable:$true] %s90_s18  ;;  %s3555_s22 = int_to_ptr.vmem [resolvable:$true] %s116_s22 }
  0x27   :  { %s3272_s25 = scalar_lea.hbm %s3845_s6, 512 }
  0x28   :  { %p3273_p2 = scmp.ne.s32.totalorder %s3845_s6, %s3272_s25  ;;  %p3276_p3 = scmp.lt.u32.totalorder %s3272_s25, %s3845_s6 }
  0x2a   :  { %p3278_p4 = pnand %p3276_p3, %p3273_p2 }
  0x2c   :  { %3281 = shalt.err (!%p3278_p4)
}
  0x2d   :  { %s3282_s4 = scalar_lea.vmem %s91_s18, 512  ;;  %p3287_p6 = scmp.lt.s32.totalorder %s91_s18, %s91_s18 }
  0x2e   :  { %p3283_p5 = scmp.ne.s32.totalorder %s91_s18, %s3282_s4  ;;  %p3288_p7 = scmp.lt.s32.totalorder %s3282_s4, %s3282_s4 }
  0x30   :  { %p3289_p8 = por %p3288_p7, %p3287_p6 }
  0x32   :  { %p3290_p9 = pnand %p3289_p8, %p3283_p5 }
  0x34   :  { %3293 = shalt.err (!%p3290_p9)
}
  0x35   :  { %96 = dma.hbm_to_vmem [thread:$0]  %s3845_s6, 512, %s91_s18, [#allocation11], %s3438_s20, %s3438_s20, %s3439_s21  }
  0x36   :  { %s3294_s26 = scalar_lea.hbm %s3848_s9, 512 }
  0x37   :  { %p3295_p10 = scmp.ne.s32.totalorder %s3848_s9, %s3294_s26  ;;  %p3298_p11 = scmp.lt.u32.totalorder %s3294_s26, %s3848_s9 }
  0x39   :  { %p3300_p12 = pnand %p3298_p11, %p3295_p10 }
  0x3b   :  { %3303 = shalt.err (!%p3300_p12)
}
  0x3c   :  { %s3304_s25 = scalar_lea.vmem %s3555_s22, 512  ;;  %p3309_p0 = scmp.lt.s32.totalorder %s3555_s22, %s3555_s22 }
  0x3d   :  { %p3305_p13 = scmp.ne.s32.totalorder %s3555_s22, %s3304_s25  ;;  %p3310_p1 = scmp.lt.s32.totalorder %s3304_s25, %s3304_s25 }
  0x3f   :  { %p3311_p2 = por %p3310_p1, %p3309_p0 }
  0x41   :  { %p3312_p3 = pnand %p3311_p2, %p3305_p13 }
  0x43   :  { %3315 = shalt.err (!%p3312_p3)
}
  0x44   :  { %122 = dma.hbm_to_vmem [thread:$0]  %s3848_s9, 512, %s3555_s22, [#allocation14], %s3438_s20, %s3438_s20, %s3439_s21  }
  0x45   :  { %s3442_s27 = smov [#allocation2]   ;;  %s3443_s30 = smov [#allocation6]  }
  0x46   :  { %s30_s29 = sshll.u32 %s3442_s27, 4  ;;  %s54_s14 = sshll.u32 %s3443_s30, 4  ;;  %s31_s29 = int_to_ptr.vmem [resolvable:$true] %s30_s29  ;;  %s3592_s14 = int_to_ptr.vmem [resolvable:$true] %s54_s14 }
  0x47   :  { %s3316_s15 = scalar_lea.hbm %s3840_s1, 1536 }
  0x48   :  { %p3317_p4 = scmp.ne.s32.totalorder %s3840_s1, %s3316_s15  ;;  %p3320_p5 = scmp.lt.u32.totalorder %s3316_s15, %s3840_s1 }
  0x4a   :  { %p3322_p6 = pnand %p3320_p5, %p3317_p4 }
  0x4c   :  { %3325 = shalt.err (!%p3322_p6)
}
  0x4d   :  { %s3326_s9 = scalar_lea.vmem %s31_s29, 1536  ;;  %p3331_p8 = scmp.lt.s32.totalorder %s31_s29, %s31_s29 }
  0x4e   :  { %p3327_p7 = scmp.ne.s32.totalorder %s31_s29, %s3326_s9  ;;  %p3332_p9 = scmp.lt.s32.totalorder %s3326_s9, %s3326_s9 }
  0x50   :  { %p3333_p10 = por %p3332_p9, %p3331_p8 }
  0x52   :  { %p3334_p11 = pnand %p3333_p10, %p3327_p7 }
  0x54   :  { %3337 = shalt.err (!%p3334_p11)
}
  0x55   :  { %36 = dma.hbm_to_vmem [thread:$0]  %s3840_s1, 1536, %s31_s29, [#allocation3], %s3438_s20, %s3438_s20, %s3439_s21  }
  0x56   :  { %s3338_s25 = scalar_lea.hbm %s3842_s3, 512 }
  0x57   :  { %p3339_p12 = scmp.ne.s32.totalorder %s3842_s3, %s3338_s25  ;;  %p3342_p13 = scmp.lt.u32.totalorder %s3338_s25, %s3842_s3 }
  0x59   :  { %p3344_p0 = pnand %p3342_p13, %p3339_p12 }
  0x5b   :  { %3347 = shalt.err (!%p3344_p0)
}
  0x5c   :  { %s3348_s4 = scalar_lea.vmem %s3592_s14, 512  ;;  %p3353_p2 = scmp.lt.s32.totalorder %s3592_s14, %s3592_s14 }
  0x5d   :  { %p3349_p1 = scmp.ne.s32.totalorder %s3592_s14, %s3348_s4  ;;  %p3354_p3 = scmp.lt.s32.totalorder %s3348_s4, %s3348_s4 }
  0x5f   :  { %p3355_p4 = por %p3354_p3, %p3353_p2 }
  0x61   :  { %p3356_p5 = pnand %p3355_p4, %p3349_p1 }
  0x63   :  { %3359 = shalt.err (!%p3356_p5)
}
  0x64   :  { %60 = dma.hbm_to_vmem [thread:$0]  %s3842_s3, 512, %s3592_s14, [#allocation5], %s3438_s20, %s3438_s20, %s3439_s21  }
  0x65   :  { %s3444_s28 = smov [#allocation9]   ;;  %s3445_s16 = smov [#allocation12]  }
  0x66   :  { %s78_s15 = sshll.u32 %s3444_s28, 4  ;;  %s104_s2 = sshll.u32 %s3445_s16, 4  ;;  %s79_s15 = int_to_ptr.vmem [resolvable:$true] %s78_s15  ;;  %s3629_s2 = int_to_ptr.vmem [resolvable:$true] %s104_s2 }
  0x67   :  { %s3360_s9 = scalar_lea.hbm %s3844_s5, 768 }
  0x68   :  { %p3361_p6 = scmp.ne.s32.totalorder %s3844_s5, %s3360_s9  ;;  %p3364_p7 = scmp.lt.u32.totalorder %s3360_s9, %s3844_s5 }
  0x6a   :  { %p3366_p8 = pnand %p3364_p7, %p3361_p6 }
  0x6c   :  { %3369 = shalt.err (!%p3366_p8)
}
  0x6d   :  { %s3370_s3 = scalar_lea.vmem %s79_s15, 768  ;;  %p3375_p10 = scmp.lt.s32.totalorder %s79_s15, %s79_s15 }
  0x6e   :  { %p3371_p9 = scmp.ne.s32.totalorder %s79_s15, %s3370_s3  ;;  %p3376_p11 = scmp.lt.s32.totalorder %s3370_s3, %s3370_s3 }
  0x70   :  { %p3377_p12 = por %p3376_p11, %p3375_p10 }
  0x72   :  { %p3378_p13 = pnand %p3377_p12, %p3371_p9 }
  0x74   :  { %3381 = shalt.err (!%p3378_p13)
}
  0x75   :  { %84 = dma.hbm_to_vmem [thread:$0]  %s3844_s5, 768, %s79_s15, [#allocation8], %s3438_s20, %s3438_s20, %s3439_s21  }
  0x76   :  { %s3382_s27 = scalar_lea.hbm %s3847_s8, 384 }
  0x77   :  { %p3383_p0 = scmp.ne.s32.totalorder %s3847_s8, %s3382_s27  ;;  %p3386_p1 = scmp.lt.u32.totalorder %s3382_s27, %s3847_s8 }
  0x79   :  { %p3388_p2 = pnand %p3386_p1, %p3383_p0 }
  0x7b   :  { %3391 = shalt.err (!%p3388_p2)
}
  0x7c   :  { %s3392_s28 = scalar_lea.vmem %s3629_s2, 384  ;;  %p3397_p4 = scmp.lt.s32.totalorder %s3629_s2, %s3629_s2 }
  0x7d   :  { %p3393_p3 = scmp.ne.s32.totalorder %s3629_s2, %s3392_s28  ;;  %p3398_p5 = scmp.lt.s32.totalorder %s3392_s28, %s3392_s28 }
  0x7f   :  { %p3399_p6 = por %p3398_p5, %p3397_p4 }
  0x81   :  { %p3400_p7 = pnand %p3399_p6, %p3393_p3 }
  0x83   :  { %3403 = shalt.err (!%p3400_p7)
}
  0x84   :  { %110 = dma.hbm_to_vmem [thread:$0]  %s3847_s8, 384, %s3629_s2, [#allocation11], %s3438_s20, %s3438_s20, %s3439_s21  }
  0x85   :  { %s3446_s16 = smov [#allocation15]   ;;  %s3404_s22 = scalar_lea.hbm %s3849_s10, 768 }
  0x86   :  { %s128_s26 = sshll.u32 %s3446_s16, 4  ;;  %p3405_p8 = scmp.ne.s32.totalorder %s3849_s10, %s3404_s22  ;;  %s129_s26 = int_to_ptr.vmem [resolvable:$true] %s128_s26 }
  0x87   :  { %p3408_p9 = scmp.lt.u32.totalorder %s3404_s22, %s3849_s10 }
  0x89   :  { %p3410_p10 = pnand %p3408_p9, %p3405_p8 }
  0x8b   :  { %3413 = shalt.err (!%p3410_p10)
}
  0x8c   :  { %s3414_s14 = scalar_lea.vmem %s129_s26, 768  ;;  %p3419_p12 = scmp.lt.s32.totalorder %s129_s26, %s129_s26 }
  0x8d   :  { %p3415_p11 = scmp.ne.s32.totalorder %s129_s26, %s3414_s14  ;;  %p3420_p13 = scmp.lt.s32.totalorder %s3414_s14, %s3414_s14 }
  0x8f   :  { %p3421_p0 = por %p3420_p13, %p3419_p12 }
  0x91   :  { %p3422_p1 = pnand %p3421_p0, %p3415_p11 }
  0x93   :  { %3425 = shalt.err (!%p3422_p1)
}
  0x94   :  { %134 = dma.hbm_to_vmem [thread:$0]  %s3849_s10, 768, %s129_s26, [#allocation14], %s3438_s20, %s3438_s20, %s3439_s21  }
  0x95   :  { %3426 = dma.done.wait [#allocation3], 1536  }
  0x96   :  { %3427 = vsyncadd [#allocation3], 4294965760 }
  0x97   :  { %3428 = dma.done.wait [#allocation5], 2048  }
  0x98   :  { %3429 = vsyncadd [#allocation5], 4294965248 }
  0x99   :  { %3430 = dma.done.wait [#allocation8], 2304  }
  0x9a   :  { %3431 = vsyncadd [#allocation8], 4294964992 }
  0x9b   :  { %3432 = dma.done.wait [#allocation11], 896  }
  0x9c   :  { %3433 = vsyncadd [#allocation11], 4294966400 }
  0x9d   :  { %3434 = dma.done.wait [#allocation14], 1280  }
  0x9e   :  { %3435 = vsyncadd [#allocation14], 4294966016  ;;  %vm172_vm0 = vcmask 261120   ;;  %v259_v0 = vld [vmem:[#allocation4 + $0x20] sm:$0xff]  ;;  %v260_v1 = vld [vmem:[#allocation4 + $0x28] sm:$0xff]  ;;  %vm343_vm1 = vcmask 130048  }
  0x9f   :  { %v261_v2 = vld [vmem:[#allocation4 + $0x30] sm:$0xff]  ;;  %v3062_v3 = vpack.c.bf16 %v260_v1, %v259_v0  ;;  %v262_v4 = vld [vmem:[#allocation4 + $0x38] sm:$0xff]  ;;  %v166_v5 = vld [vmem:[%s3839_s0] sm:$0xff]  ;;  %v3447_v37 = vmov 0   ;;  %vm1373_vm2 = vcmask 64512  }
  0xa0   :  { %v3066_v6 = vpack.c.bf16 %v262_v4, %v261_v2  ;;  %2809 = vmatprep.mubr.msk.f32.mxu1 %vm172_vm0, %v166_v5  ;;  %v168_v7 = vld [vmem:[#allocation4] sm:$0xff]  ;;  %v169_v8 = vld [vmem:[#allocation4 + $0x8] sm:$0xff]  ;;  %2798 = vmatprep.mubr.msk.f32.mxu0 %vm172_vm0, %v166_v5  ;;  %v170_v11 = vld [vmem:[#allocation4 + $0x10] sm:$0xff] }
  0xa1   :  { %3063 = vmatprep.subr.bf16.mxu1 %v3062_v3  ;;  %v3054_v9 = vpack.c.bf16 %v169_v8, %v168_v7  ;;  %v167_v10 = vld [vmem:[%s3839_s0 + $0x8] sm:$0xff]  ;;  %v171_v12 = vld [vmem:[#allocation4 + $0x18] sm:$0xff]  ;;  %v339_v14 = vld [vmem:[#allocation2 + $0x20] sm:$0xff]  ;;  %3226 = vset.pattern.permute.xlu0 %v3447_v37 }
  0xa2   :  { %3065 = vmatpush3.bf16.msra.mxu1 %v3062_v3  ;;  %v3058_v13 = vpack.c.bf16 %v171_v12, %v170_v11  ;;  %v539_v15 = vld [vmem:[#allocation4 + $0x40] sm:$0xff]  ;;  %v540_v16 = vld [vmem:[#allocation4 + $0x48] sm:$0xff]  ;;  %v541_v21 = vld [vmem:[#allocation4 + $0x50] sm:$0xff]  ;;  %3227 = vset.pattern.permute.xlu1 %v3447_v37 }
  0xa3   :  { %3067 = vmatprep.subr.bf16.mxu1 %v3066_v6  ;;  %3055 = vmatprep.subr.bf16.mxu0 %v3054_v9  ;;  %v3078_v20 = vpack.c.bf16 %v540_v16, %v539_v15  ;;  %v542_v22 = vld [vmem:[#allocation4 + $0x58] sm:$0xff]  ;;  %v340_v23 = vld [vmem:[#allocation2 + $0x28] sm:$0xff]  ;;  %v341_v24 = vld [vmem:[#allocation2 + $0x30] sm:$0xff] }
  0xa4   :  { %3057 = vmatpush3.bf16.msra.mxu0 %v3054_v9  ;;  %v3082_v25 = vpack.c.bf16 %v542_v22, %v541_v21  ;;  %v342_v26 = vld [vmem:[#allocation2 + $0x38] sm:$0xff]  ;;  %v254_v30 = vld [vmem:[#allocation2] sm:$0xff]  ;;  %v255_v31 = vld [vmem:[#allocation2 + $0x8] sm:$0xff] }
  0xa5   :  { %3059 = vmatprep.subr.bf16.mxu0 %v3058_v13  ;;  %v256_v32 = vld [vmem:[#allocation2 + $0x10] sm:$0xff]  ;;  %v257_v33 = vld [vmem:[#allocation2 + $0x18] sm:$0xff]  ;;  %v619_v34 = vld [vmem:[#allocation2 + $0x40] sm:$0xff] }
  0xa6   :  { %3069 = vmatpush3.bf16.msra.mxu1 %v3066_v6  ;;  %v724_v35 = vld [vmem:[#allocation6] sm:$0xff]  ;;  %v726_v36 = vld [vmem:[#allocation6 + $0x10] sm:$0xff]  ;;  %v725_v38 = vld [vmem:[#allocation6 + $0x8] sm:$0xff] }
  0xa7   :  { %730 = vperm.xlu0 %3226, %v724_v35   ;;  %740 = vperm.xlu1 %3227, %v726_v36   ;;  %v727_v39 = vld [vmem:[#allocation6 + $0x18] sm:$0xff]  ;;  %v1340_v40 = vld [vmem:[#allocation10] sm:$0xff]  ;;  %v1342_v42 = vld [vmem:[#allocation10 + $0x10] sm:$0xff] }
  0xa8   :  { %3061 = vmatpush3.bf16.msra.mxu0 %v3058_v13  ;;  %v1341_v41 = vld [vmem:[#allocation10 + $0x8] sm:$0xff]  ;;  %v1343_v43 = vld [vmem:[#allocation10 + $0x18] sm:$0xff]  ;;  %v1955_v45 = vld [vmem:[#allocation13 + $0x8] sm:$0xff] }
  0xa9   :  { %2810 = vmatmul.mubr.msk.f32.vlgmr.msra.gmra.mrb[0].mxu1 %vm172_vm0, %v167_v10  ;;  %v1954_v44 = vld [vmem:[#allocation13] sm:$0xff]  ;;  %v1956_v46 = vld [vmem:[#allocation13 + $0x10] sm:$0xff]  ;;  %v1957_v47 = vld [vmem:[#allocation13 + $0x18] sm:$0xff] }
  0xaa   :  { %2816 = vmatprep.mubr.msk.f32.mxu1 %vm343_vm1, %v339_v14  ;;  %v2514_v48 = vld [vmem:[%s3851_s12] sm:$0xff]  ;;  %v2515_v49 = vld [vmem:[%s3851_s12 + $0x8] sm:$0xff]  ;;  %v621_v58 = vld [vmem:[#allocation2 + $0x50] sm:$0xff] }
  0xab   :  { %2799 = vmatmul.mubr.msk.f32.vlgmr.msra.gmra.mrb[0].mxu0 %vm172_vm0, %v167_v10  ;;  %735 = vperm.xlu0 %3226, %v725_v38   ;;  %v620_v57 = vld [vmem:[#allocation2 + $0x48] sm:$0xff]  ;;  %v622_v59 = vld [vmem:[#allocation2 + $0x58] sm:$0xff]  ;;  %v756_v60 = vld [vmem:[#allocation9] sm:$0xff] }
  0xac   :  { %2826 = vmatprep.mubr.msk.f32.mxu0 %vm343_vm1, %v254_v30  ;;  %745 = vperm.xlu1 %3227, %v727_v39   ;;  %v757_v61 = vld [vmem:[#allocation9 + $0x8] sm:$0xff]  ;;  %v860_v63 = vld [vmem:[#allocation9 + $0x10] sm:$0xff]  ;;  %v861_v0 = vld [vmem:[#allocation9 + $0x18] sm:$0xff] }
  0xad   :  { %v3090_v62 = vpack.c.bf16 %v757_v61, %v756_v60  ;;  %v3094_v1 = vpack.c.bf16 %v861_v0, %v860_v63  ;;  %v1147_v12 = vld [vmem:[#allocation9 + $0x20] sm:$0xff]  ;;  %v1148_v13 = vld [vmem:[#allocation9 + $0x28] sm:$0xff] }
  0xae   :  { %v3114_v21 = vpack.c.bf16 %v1148_v13, %v1147_v12 }
  0xaf   :  { %1346 = vperm.xlu0 %3226, %v1340_v40   ;;  %v949_v40 = vld [vmem:[#allocation7 + $0x28] sm:$0xff] }
  0xb0   :  { %1351 = vperm.xlu1 %3227, %v1341_v41  }
  0xb3   :  { %1356 = vperm.xlu0 %3226, %v1342_v42   ;;  %v950_v42 = vld [vmem:[#allocation7 + $0x30] sm:$0xff] }
  0xb4   :  { %1361 = vperm.xlu1 %3227, %v1343_v43  }
  0xb7   :  { %1960 = vperm.xlu0 %3226, %v1954_v44  }
  0xb8   :  { %1965 = vperm.xlu1 %3227, %v1955_v45   ;;  %v951_v45 = vld [vmem:[#allocation7 + $0x38] sm:$0xff] }
  0xbb   :  { %1970 = vperm.xlu0 %3226, %v1956_v46  }
  0xbc   :  { %1975 = vperm.xlu1 %3227, %v1957_v47   ;;  %v855_v47 = vld [vmem:[#allocation7] sm:$0xff] }
  0xbf   :  { %2518 = vperm.xlu0 %3226, %v2514_v48   ;;  %v856_v48 = vld [vmem:[#allocation7 + $0x8] sm:$0xff] }
  0xc0   :  { %2523 = vperm.xlu1 %3227, %v2515_v49   ;;  %v857_v49 = vld [vmem:[#allocation7 + $0x10] sm:$0xff] }
 0x126   :  { %v731_v2 = vpop.permute.xlu0 %730  ;;  %v741_v3 = vpop.permute.xlu1 %740 }
 0x12a   :  { %v736_v7 = vpop.permute.xlu0 %735 }
 0x12b   :  { %v746_v16 = vpop.permute.xlu1 %745 }
 0x17c   :  { %v2811_v17 = vpop.f32.mrb[0].mxu1 }
 0x17d   :  { %v329_v18 = vpop.f32.mrb[1].mxu1 }
 0x17e   :  { %v3070_v19 = vpack.c.bf16 %v2811_v17, %v329_v18  ;;  %v2800_v27 = vpop.f32.mrb[0].mxu0 }
 0x17f   :  { %v245_v28 = vpop.f32.mrb[1].mxu0 }
 0x180   :  { %3071 = vmatprep.subr.bf16.mxu1 %v3070_v19  ;;  %v3074_v29 = vpack.c.bf16 %v2800_v27, %v245_v28 }
 0x181   :  { %3073 = vmatpush3.bf16.msra.mxu1 %v3070_v19 }
 0x182   :  { %3079 = vmatprep.subr.bf16.mxu1 %v3078_v20  ;;  %3075 = vmatprep.subr.bf16.mxu0 %v3074_v29 }
 0x183   :  { %3077 = vmatpush3.bf16.msra.mxu0 %v3074_v29 }
 0x184   :  { %2817 = vmatmul.mubr.msk.f32.vlgmr.msra.gmra.mrb[2].mxu1 %vm343_vm1, %v340_v23 }
 0x185   :  { %3081 = vmatpush3.bf16.msra.mxu1 %v3078_v20  ;;  %2819 = vmatprep.mubr.msk.f32.mxu1 %vm343_vm1, %v341_v24 }
 0x186   :  { %3083 = vmatprep.subr.bf16.mxu1 %v3082_v25  ;;  %2827 = vmatmul.mubr.msk.f32.vlgmr.msra.gmra.mrb[2].mxu0 %vm343_vm1, %v255_v31 }
 0x187   :  { %2829 = vmatprep.mubr.msk.f32.mxu0 %vm343_vm1, %v256_v32 }
 0x188   :  { %2820 = vmatmul.mubr.msk.f32.gmra.mrb[4].mxu1 %vm343_vm1, %v342_v26 }
 0x189   :  { %3085 = vmatpush3.bf16.msra.mxu1 %v3082_v25  ;;  %2840 = vmatprep.mubr.msk.f32.mxu1 %vm172_vm0, %v166_v5  ;;  %v948_v25 = vld [vmem:[#allocation7 + $0x20] sm:$0xff] }
 0x18a   :  { %2830 = vmatmul.mubr.msk.f32.gmra.mrb[4].mxu0 %vm343_vm1, %v257_v33  ;;  %3091 = vmatprep.subr.bf16.mxu1 %v3090_v62 }
 0x18b   :  { %2847 = vmatprep.mubr.msk.f32.mxu0 %vm343_vm1, %v619_v34 }
 0x18c   :  { %2841 = vmatmul.mubr.msk.f32.vlgmr.msra.gmra.mrb[6].mxu1 %vm172_vm0, %v167_v10 }
 0x18d   :  { %3093 = vmatpush3.bf16.msra.mxu1 %v3090_v62 }
 0x18e   :  { %3095 = vmatprep.subr.bf16.mxu1 %v3094_v1 }
 0x257   :  { %v2818_v50 = vpop.f32.mrb[2].mxu1 }
 0x258   :  { %v422_v51 = vpop.f32.mrb[3].mxu1 }
 0x25b   :  { %v2821_v52 = vpop.f32.mrb[4].mxu1 }
 0x25c   :  { %v432_v53 = vpop.f32.mrb[5].mxu1 }
 0x25f   :  { %v2842_v54 = vpop.f32.mrb[6].mxu1 }
 0x260   :  { %v609_v55 = vpop.f32.mrb[7].mxu1 }
 0x261   :  { %v3086_v56 = vpack.c.bf16 %v2842_v54, %v609_v55  ;;  %v1238_v54 = vld [vmem:[#allocation7 + $0x58] sm:$0xff]  ;;  %v1372_v55 = vld [vmem:[#allocation12] sm:$0xff] }
 0x263   :  { %3087 = vmatprep.subr.bf16.mxu0 %v3086_v56 }
 0x264   :  { %3089 = vmatpush3.bf16.msra.mxu0 %v3086_v56  ;;  %v1476_v56 = vld [vmem:[#allocation12 + $0x8] sm:$0xff] }
 0x267   :  { %2848 = vmatmul.mubr.msk.f32.vlgmr.msra.gmra.mrb[2].mxu0 %vm343_vm1, %v620_v57  ;;  %v1352_v57 = vpop.permute.xlu1 %1351 }
 0x268   :  { %2850 = vmatprep.mubr.msk.f32.mxu0 %vm343_vm1, %v621_v58  ;;  %v1347_v58 = vpop.permute.xlu0 %1346 }
 0x26b   :  { %2851 = vmatmul.mubr.msk.f32.gmra.mrb[4].mxu0 %vm343_vm1, %v622_v59  ;;  %v1362_v63 = vpop.permute.xlu1 %1361 }
 0x26c   :  { %2881 = vmatprep.mubr.msk.f32.mxu0 %vm172_vm0, %v948_v25  ;;  %v2592_v25 = vld [vmem:[%s3846_s7 + $0x28] sm:$0xff] }
 0x33a   :  { %v2849_v4 = vpop.f32.mrb[2].mxu0 }
 0x33b   :  { %v3186_v5 = vadd.f32 %v2849_v4, %v2818_v50  ;;  %v701_v6 = vpop.f32.mrb[3].mxu0  ;;  %v858_v50 = vld [vmem:[#allocation7 + $0x18] sm:$0xff] }
 0x33c   :  { %v3187_v8 = vadd.f32 %v701_v6, %v422_v51  ;;  %v1235_v51 = vld [vmem:[#allocation7 + $0x40] sm:$0xff] }
 0x33d   :  { %v749_v9 = vadd.f32 %v3186_v5, %v736_v7  ;;  %v1762_v7 = vld [vmem:[#allocation12 + $0x10] sm:$0xff] }
 0x33e   :  { %v748_v10 = vadd.f32 %v3187_v8, %v731_v2  ;;  %v2852_v11 = vpop.f32.mrb[4].mxu0  ;;  %v1357_v2 = vpop.permute.xlu0 %1356 }
 0x33f   :  { %v3188_v14 = vadd.f32 %v2852_v11, %v2821_v52  ;;  %v711_v15 = vpop.f32.mrb[5].mxu0  ;;  %v753_v19 = vmax.f32 %v749_v9, 0.0  ;;  %v1236_v52 = vld [vmem:[#allocation7 + $0x48] sm:$0xff] }
 0x340   :  { %v752_v17 = vmax.f32 %v748_v10, 0.0  ;;  %v3189_v18 = vadd.f32 %v711_v15, %v432_v53  ;;  %v1237_v53 = vld [vmem:[#allocation7 + $0x50] sm:$0xff]  ;;  %v2591_v10 = vld [vmem:[%s3846_s7 + $0x20] sm:$0xff] }
 0x341   :  { %v751_v20 = vadd.f32 %v3188_v14, %v746_v16 }
 0x342   :  { %v750_v22 = vadd.f32 %v3189_v18, %v741_v3  ;;  %2857 = vmatprep.mubr.msk.f32.mxu1 %vm343_vm1, %v752_v17 }
 0x343   :  { %2858 = vmatmul.mubr.msk.f32.vlgmr.msra.gmra.mrb[8].mxu1 %vm343_vm1, %v753_v19  ;;  %v755_v24 = vmax.f32 %v751_v20, 0.0 }
 0x344   :  { %v754_v23 = vmax.f32 %v750_v22, 0.0  ;;  %3097 = vmatpush3.bf16.msra.mxu1 %v3094_v1 }
 0x345   :  { %3115 = vmatprep.subr.bf16.mxu1 %v3114_v21 }
 0x346   :  { %2860 = vmatprep.mubr.msk.f32.mxu1 %vm343_vm1, %v754_v23 }
 0x347   :  { %2861 = vmatmul.mubr.msk.f32.gmra.mrb[10].mxu1 %vm343_vm1, %v755_v24 }
 0x348   :  { %2867 = vmatprep.mubr.msk.f32.mxu1 %vm343_vm1, %v752_v17 }
 0x34b   :  { %2868 = vmatmul.mubr.msk.f32.vlgmr.msra.gmra.mrb[12].mxu1 %vm343_vm1, %v753_v19 }
 0x34c   :  { %2870 = vmatprep.mubr.msk.f32.mxu1 %vm343_vm1, %v754_v23  ;;  %3117 = vmatpush3.bf16.msra.mxu1 %v3114_v21 }
 0x34d   :  { %2925 = vmatprep.subr.mxu1 %v1372_v55 }
 0x34f   :  { %2871 = vmatmul.mubr.msk.f32.gmra.mrb[14].mxu1 %vm343_vm1, %v755_v24 }
 0x350   :  { %2905 = vmatprep.mubr.msk.f32.mxu1 %vm343_vm1, %v752_v17 }
 0x353   :  { %2906 = vmatmul.mubr.msk.f32.vlgmr.msra.gmra.mrb[16].mxu1 %vm343_vm1, %v753_v19 }
 0x354   :  { %2908 = vmatprep.mubr.msk.f32.mxu1 %vm343_vm1, %v754_v23  ;;  %2926 = vmatpush3.msra.mxu1 %v1372_v55 }
 0x355   :  { %2933 = vmatprep.subr.mxu1 %v1476_v56 }
 0x357   :  { %2909 = vmatmul.mubr.msk.f32.gmra.mrb[18].mxu1 %vm343_vm1, %v755_v24 }
 0x416   :  { %v2859_v26 = vpop.f32.mrb[8].mxu1 }
 0x417   :  { %v836_v27 = vpop.f32.mrb[9].mxu1 }
 0x418   :  { %v3106_v28 = vpack.c.bf16 %v2859_v26, %v836_v27  ;;  %v2593_v27 = vld [vmem:[%s3846_s7 + $0x30] sm:$0xff] }
 0x41a   :  { %v2862_v29 = vpop.f32.mrb[10].mxu1 }
 0x41b   :  { %v846_v30 = vpop.f32.mrb[11].mxu1 }
 0x41c   :  { %v3110_v31 = vpack.c.bf16 %v2862_v29, %v846_v30  ;;  %v2594_v30 = vld [vmem:[%s3846_s7 + $0x38] sm:$0xff] }
 0x41e   :  { %v2869_v32 = vpop.f32.mrb[12].mxu1 }
 0x41f   :  { %v928_v33 = vpop.f32.mrb[13].mxu1 }
 0x420   :  { %v3098_v34 = vpack.c.bf16 %v2869_v32, %v928_v33  ;;  %v1471_v32 = vld [vmem:[%s3846_s7] sm:$0xff]  ;;  %v1472_v33 = vld [vmem:[%s3846_s7 + $0x8] sm:$0xff] }
 0x422   :  { %v2872_v35 = vpop.f32.mrb[14].mxu1  ;;  %3099 = vmatprep.subr.bf16.mxu0 %v3098_v34 }
 0x423   :  { %v938_v36 = vpop.f32.mrb[15].mxu1  ;;  %3101 = vmatpush3.bf16.msra.mxu0 %v3098_v34  ;;  %v1473_v34 = vld [vmem:[%s3846_s7 + $0x10] sm:$0xff] }
 0x424   :  { %v3102_v37 = vpack.c.bf16 %v2872_v35, %v938_v36  ;;  %v1474_v35 = vld [vmem:[%s3846_s7 + $0x18] sm:$0xff]  ;;  %v2607_v36 = vld [vmem:[%s3846_s7 + $0x40] sm:$0xff] }
 0x426   :  { %3103 = vmatprep.subr.bf16.mxu0 %v3102_v37  ;;  %v2907_v38 = vpop.f32.mrb[16].mxu1 }
 0x427   :  { %3105 = vmatpush3.bf16.msra.mxu0 %v3102_v37  ;;  %v1215_v39 = vpop.f32.mrb[17].mxu1  ;;  %v2608_v37 = vld [vmem:[%s3846_s7 + $0x48] sm:$0xff] }
 0x428   :  { %v3118_v41 = vpack.c.bf16 %v2907_v38, %v1215_v39  ;;  %3107 = vmatprep.subr.bf16.mxu0 %v3106_v28  ;;  %v2609_v38 = vld [vmem:[%s3846_s7 + $0x50] sm:$0xff]  ;;  %v2610_v39 = vld [vmem:[%s3846_s7 + $0x58] sm:$0xff] }
 0x42a   :  { %2882 = vmatmul.mubr.msk.f32.vlgmr.msra.gmra.mrb[6].mxu0 %vm172_vm0, %v949_v40  ;;  %v2910_v43 = vpop.f32.mrb[18].mxu1  ;;  %v1986_v40 = vld [vmem:[%s3850_s11] sm:$0xff] }
 0x42b   :  { %3109 = vmatpush3.bf16.msra.mxu0 %v3106_v28  ;;  %v1225_v44 = vpop.f32.mrb[19].mxu1  ;;  %2884 = vmatprep.mubr.msk.f32.mxu0 %vm172_vm0, %v950_v42 }
 0x42c   :  { %v3122_v46 = vpack.c.bf16 %v2910_v43, %v1225_v44  ;;  %3111 = vmatprep.subr.bf16.mxu0 %v3110_v31  ;;  %v2619_v43 = vld [vmem:[%s3850_s11 + $0x10] sm:$0xff]  ;;  %v2620_v44 = vld [vmem:[%s3850_s11 + $0x18] sm:$0xff] }
 0x42e   :  { %2885 = vmatmul.mubr.msk.f32.gmra.mrb[8].mxu0 %vm172_vm0, %v951_v45  ;;  %v3154_v45 = vpack.c.bf16 %v2620_v44, %v2619_v43 }
 0x42f   :  { %3113 = vmatpush3.bf16.msra.mxu0 %v3110_v31  ;;  %2895 = vmatprep.mubr.msk.f32.mxu0 %vm172_vm0, %v855_v47  ;;  %v1961_v47 = vpop.permute.xlu0 %1960 }
 0x430   :  { %3119 = vmatprep.subr.bf16.mxu0 %v3118_v41 }
 0x432   :  { %2896 = vmatmul.mubr.msk.f32.vlgmr.msra.gmra.mrb[6].mxu0 %vm172_vm0, %v856_v48 }
 0x433   :  { %3121 = vmatpush3.bf16.msra.mxu0 %v3118_v41  ;;  %2898 = vmatprep.mubr.msk.f32.mxu0 %vm172_vm0, %v857_v49  ;;  %v1987_v41 = vld [vmem:[%s3850_s11 + $0x8] sm:$0xff] }
 0x434   :  { %3123 = vmatprep.subr.bf16.mxu0 %v3122_v46  ;;  %v3150_v42 = vpack.c.bf16 %v1987_v41, %v1986_v40 }
 0x436   :  { %2899 = vmatmul.mubr.msk.f32.gmra.mrb[8].mxu0 %vm172_vm0, %v858_v50 }
 0x437   :  { %3125 = vmatpush3.bf16.msra.mxu0 %v3122_v46  ;;  %2919 = vmatprep.mubr.msk.f32.mxu0 %vm172_vm0, %v1235_v51  ;;  %v1966_v46 = vpop.permute.xlu1 %1965 }
 0x43a   :  { %2920 = vmatmul.mubr.msk.f32.vlgmr.msra.gmra.mrb[6].mxu0 %vm172_vm0, %v1236_v52  ;;  %v2629_v52 = vld [vmem:[%s3850_s11 + $0x20] sm:$0xff] }
 0x43b   :  { %2922 = vmatprep.mubr.msk.f32.mxu0 %vm172_vm0, %v1237_v53  ;;  %v2630_v53 = vld [vmem:[%s3850_s11 + $0x28] sm:$0xff] }
 0x43e   :  { %2923 = vmatmul.mubr.msk.f32.gmra.mrb[8].mxu0 %vm172_vm0, %v1238_v54  ;;  %v1976_v54 = vpop.permute.xlu1 %1975 }
 0x43f   :  { %2949 = vmatprep.mubr.msk.f32.mxu0 %vm172_vm0, %v2591_v10 }
 0x50d   :  { %v2921_v59 = vpop.f32.mrb[6].mxu0 }
 0x50e   :  { %v1365_v60 = vadd.f32 %v2921_v59, %v1352_v57  ;;  %v1317_v61 = vpop.f32.mrb[7].mxu0  ;;  %v1971_v57 = vpop.permute.xlu0 %1970 }
 0x50f   :  { %v1364_v62 = vadd.f32 %v1347_v58, %v1317_v61  ;;  %v3174_v61 = vpack.c.bf16 %v2630_v53, %v2629_v52 }
 0x510   :  { %v1369_v3 = vmax.f32 %v1365_v60, 0.0 }
 0x511   :  { %v1368_v0 = vmax.f32 %v1364_v62, 0.0  ;;  %v2924_v1 = vpop.f32.mrb[8].mxu0 }
 0x512   :  { %v1367_v4 = vadd.f32 %v2924_v1, %v1362_v63  ;;  %v1327_v5 = vpop.f32.mrb[9].mxu0  ;;  %v2176_v1 = vld [vmem:[#allocation15 + $0x10] sm:$0xff] }
 0x513   :  { %v1366_v6 = vadd.f32 %v1357_v2, %v1327_v5  ;;  %2927 = vmatprep.mubr.msk.f32.mxu1 %vm1373_vm2, %v1368_v0 }
 0x514   :  { %2928 = vmatmul.mubr.msk.f32.vlgmr.msra.gmra.mrb[20].mxu1 %vm1373_vm2, %v1369_v3  ;;  %v1371_v9 = vmax.f32 %v1367_v4, 0.0 }
 0x515   :  { %v1370_v8 = vmax.f32 %v1366_v6, 0.0  ;;  %2934 = vmatpush3.msra.mxu1 %v1476_v56 }
 0x516   :  { %2969 = vmatprep.subr.mxu1 %v1762_v7 }
 0x517   :  { %2930 = vmatprep.mubr.msk.f32.mxu1 %vm1373_vm2, %v1370_v8 }
 0x518   :  { %2931 = vmatmul.mubr.msk.f32.gmra.mrb[22].mxu1 %vm1373_vm2, %v1371_v9 }
 0x519   :  { %2935 = vmatprep.mubr.msk.f32.mxu1 %vm1373_vm2, %v1368_v0 }
 0x51c   :  { %2936 = vmatmul.mubr.msk.f32.vlgmr.msra.gmra.mrb[24].mxu1 %vm1373_vm2, %v1369_v3 }
 0x51d   :  { %2938 = vmatprep.mubr.msk.f32.mxu1 %vm1373_vm2, %v1370_v8  ;;  %2970 = vmatpush3.msra.mxu1 %v1762_v7 }
 0x51e   :  { %3151 = vmatprep.subr.bf16.mxu1 %v3150_v42 }
 0x520   :  { %2939 = vmatmul.mubr.msk.f32.gmra.mrb[26].mxu1 %vm1373_vm2, %v1371_v9 }
 0x521   :  { %2971 = vmatprep.mubr.msk.f32.mxu1 %vm1373_vm2, %v1368_v0 }
 0x524   :  { %2972 = vmatmul.mubr.msk.f32.vlgmr.msra.gmra.mrb[28].mxu1 %vm1373_vm2, %v1369_v3 }
 0x525   :  { %2974 = vmatprep.mubr.msk.f32.mxu1 %vm1373_vm2, %v1370_v8  ;;  %3153 = vmatpush3.bf16.msra.mxu1 %v3150_v42 }
 0x526   :  { %3155 = vmatprep.subr.bf16.mxu1 %v3154_v45 }
 0x528   :  { %2975 = vmatmul.mubr.msk.f32.gmra.mrb[30].mxu1 %vm1373_vm2, %v1371_v9 }
 0x5e7   :  { %v2929_v11 = vpop.f32.mrb[20].mxu1 }
 0x5e8   :  { %v1452_v12 = vpop.f32.mrb[21].mxu1 }
 0x5e9   :  { %v3134_v13 = vpack.c.bf16 %v2929_v11, %v1452_v12 }
 0x5eb   :  { %v2932_v14 = vpop.f32.mrb[22].mxu1 }
 0x5ec   :  { %v1462_v15 = vpop.f32.mrb[23].mxu1 }
 0x5ed   :  { %v3138_v16 = vpack.c.bf16 %v2932_v14, %v1462_v15 }
 0x5ef   :  { %v2937_v17 = vpop.f32.mrb[24].mxu1 }
 0x5f0   :  { %v1543_v18 = vpop.f32.mrb[25].mxu1 }
 0x5f1   :  { %v3126_v19 = vpack.c.bf16 %v2937_v17, %v1543_v18  ;;  %v2085_v18 = vld [vmem:[#allocation15] sm:$0xff] }
 0x5f3   :  { %v2940_v20 = vpop.f32.mrb[26].mxu1  ;;  %3127 = vmatprep.subr.bf16.mxu0 %v3126_v19 }
 0x5f4   :  { %v1553_v21 = vpop.f32.mrb[27].mxu1  ;;  %3129 = vmatpush3.bf16.msra.mxu0 %v3126_v19 }
 0x5f5   :  { %v3130_v22 = vpack.c.bf16 %v2940_v20, %v1553_v21 }
 0x5f7   :  { %3131 = vmatprep.subr.bf16.mxu0 %v3130_v22  ;;  %v2973_v23 = vpop.f32.mrb[28].mxu1 }
 0x5f8   :  { %3133 = vmatpush3.bf16.msra.mxu0 %v3130_v22  ;;  %v1829_v24 = vpop.f32.mrb[29].mxu1  ;;  %v2086_v22 = vld [vmem:[#allocation15 + $0x8] sm:$0xff] }
 0x5f9   :  { %v3142_v26 = vpack.c.bf16 %v2973_v23, %v1829_v24  ;;  %3135 = vmatprep.subr.bf16.mxu0 %v3134_v13  ;;  %v2429_v23 = vld [vmem:[#allocation15 + $0x20] sm:$0xff]  ;;  %v2430_v24 = vld [vmem:[#allocation15 + $0x28] sm:$0xff] }
 0x5fb   :  { %2950 = vmatmul.mubr.msk.f32.vlgmr.msra.gmra.mrb[10].mxu0 %vm172_vm0, %v2592_v25  ;;  %v2976_v28 = vpop.f32.mrb[30].mxu1  ;;  %v2524_v25 = vpop.permute.xlu1 %2523 }
 0x5fc   :  { %3137 = vmatpush3.bf16.msra.mxu0 %v3134_v13  ;;  %v1839_v29 = vpop.f32.mrb[31].mxu1  ;;  %2952 = vmatprep.mubr.msk.f32.mxu0 %vm172_vm0, %v2593_v27  ;;  %v2519_v27 = vpop.permute.xlu0 %2518 }
 0x5fd   :  { %v3146_v31 = vpack.c.bf16 %v2976_v28, %v1839_v29  ;;  %3139 = vmatprep.subr.bf16.mxu0 %v3138_v16 }
 0x5ff   :  { %2953 = vmatmul.mubr.msk.f32.gmra.mrb[12].mxu0 %vm172_vm0, %v2594_v30 }
 0x600   :  { %3141 = vmatpush3.bf16.msra.mxu0 %v3138_v16  ;;  %2963 = vmatprep.mubr.msk.f32.mxu0 %vm172_vm0, %v1471_v32  ;;  %v2177_v16 = vld [vmem:[#allocation15 + $0x18] sm:$0xff] }
 0x601   :  { %3143 = vmatprep.subr.bf16.mxu0 %v3142_v26 }
 0x603   :  { %2964 = vmatmul.mubr.msk.f32.vlgmr.msra.gmra.mrb[10].mxu0 %vm172_vm0, %v1472_v33 }
 0x604   :  { %3145 = vmatpush3.bf16.msra.mxu0 %v3142_v26  ;;  %2966 = vmatprep.mubr.msk.f32.mxu0 %vm172_vm0, %v1473_v34 }
 0x605   :  { %3147 = vmatprep.subr.bf16.mxu0 %v3146_v31 }
 0x607   :  { %2967 = vmatmul.mubr.msk.f32.gmra.mrb[12].mxu0 %vm172_vm0, %v1474_v35 }
 0x608   :  { %3149 = vmatpush3.bf16.msra.mxu0 %v3146_v31  ;;  %2985 = vmatprep.mubr.msk.f32.mxu0 %vm172_vm0, %v2607_v36 }
 0x60b   :  { %2986 = vmatmul.mubr.msk.f32.vlgmr.msra.gmra.mrb[10].mxu0 %vm172_vm0, %v2608_v37 }
 0x60c   :  { %2988 = vmatprep.mubr.msk.f32.mxu0 %vm172_vm0, %v2609_v38 }
 0x60f   :  { %2989 = vmatmul.mubr.msk.f32.gmra.mrb[12].mxu0 %vm172_vm0, %v2610_v39 }
 0x610   :  { %3019 = vmatprep.mubr.msk.f32.mxu0 %vm172_vm0, %v2176_v1 }
 0x6de   :  { %v2987_v48 = vpop.f32.mrb[10].mxu0 }
 0x6df   :  { %v1979_v49 = vadd.f32 %v2987_v48, %v1966_v46  ;;  %v1931_v50 = vpop.f32.mrb[11].mxu0 }
 0x6e0   :  { %v1978_v51 = vadd.f32 %v1961_v47, %v1931_v50 }
 0x6e1   :  { %v1983_v58 = vmax.f32 %v1979_v49, 0.0 }
 0x6e2   :  { %v1982_v55 = vmax.f32 %v1978_v51, 0.0  ;;  %v2990_v56 = vpop.f32.mrb[12].mxu0 }
 0x6e3   :  { %v1981_v59 = vadd.f32 %v2990_v56, %v1976_v54  ;;  %v1941_v60 = vpop.f32.mrb[13].mxu0 }
 0x6e4   :  { %v1980_v62 = vadd.f32 %v1971_v57, %v1941_v60  ;;  %2995 = vmatprep.mubr.msk.f32.mxu1 %vm343_vm1, %v1982_v55 }
 0x6e5   :  { %2996 = vmatmul.mubr.msk.f32.vlgmr.msra.gmra.mrb[32].mxu1 %vm343_vm1, %v1983_v58  ;;  %v1985_v0 = vmax.f32 %v1981_v59, 0.0 }
 0x6e6   :  { %v1984_v63 = vmax.f32 %v1980_v62, 0.0  ;;  %3157 = vmatpush3.bf16.msra.mxu1 %v3154_v45 }
 0x6e7   :  { %3175 = vmatprep.subr.bf16.mxu1 %v3174_v61 }
 0x6e8   :  { %2998 = vmatprep.mubr.msk.f32.mxu1 %vm343_vm1, %v1984_v63 }
 0x6e9   :  { %2999 = vmatmul.mubr.msk.f32.gmra.mrb[34].mxu1 %vm343_vm1, %v1985_v0 }
 0x6ea   :  { %3005 = vmatprep.mubr.msk.f32.mxu1 %vm343_vm1, %v1982_v55 }
 0x6ed   :  { %3006 = vmatmul.mubr.msk.f32.vlgmr.msra.gmra.mrb[36].mxu1 %vm343_vm1, %v1983_v58 }
 0x6ee   :  { %3008 = vmatprep.mubr.msk.f32.mxu1 %vm343_vm1, %v1984_v63  ;;  %3177 = vmatpush3.bf16.msra.mxu1 %v3174_v61 }
 0x6f1   :  { %3009 = vmatmul.mubr.msk.f32.gmra.mrb[38].mxu1 %vm343_vm1, %v1985_v0 }
 0x6f2   :  { %3037 = vmatprep.mubr.msk.f32.mxu1 %vm343_vm1, %v1982_v55 }
 0x6f5   :  { %3038 = vmatmul.mubr.msk.f32.vlgmr.msra.gmra.mrb[40].mxu1 %vm343_vm1, %v1983_v58 }
 0x6f6   :  { %3040 = vmatprep.mubr.msk.f32.mxu1 %vm343_vm1, %v1984_v63 }
 0x6f9   :  { %3041 = vmatmul.mubr.msk.f32.gmra.mrb[42].mxu1 %vm343_vm1, %v1985_v0 }
 0x7b8   :  { %v2997_v2 = vpop.f32.mrb[32].mxu1 }
 0x7b9   :  { %v2066_v3 = vpop.f32.mrb[33].mxu1 }
 0x7ba   :  { %v3166_v4 = vpack.c.bf16 %v2997_v2, %v2066_v3 }
 0x7bc   :  { %v3000_v5 = vpop.f32.mrb[34].mxu1 }
 0x7bd   :  { %v2076_v6 = vpop.f32.mrb[35].mxu1 }
 0x7be   :  { %v3170_v7 = vpack.c.bf16 %v3000_v5, %v2076_v6 }
 0x7c0   :  { %v3007_v8 = vpop.f32.mrb[36].mxu1 }
 0x7c1   :  { %v2156_v9 = vpop.f32.mrb[37].mxu1 }
 0x7c2   :  { %v3158_v10 = vpack.c.bf16 %v3007_v8, %v2156_v9 }
 0x7c4   :  { %v3010_v11 = vpop.f32.mrb[38].mxu1  ;;  %3159 = vmatprep.subr.bf16.mxu0 %v3158_v10 }
 0x7c5   :  { %v2166_v12 = vpop.f32.mrb[39].mxu1  ;;  %3161 = vmatpush3.bf16.msra.mxu0 %v3158_v10 }
 0x7c6   :  { %v3162_v13 = vpack.c.bf16 %v3010_v11, %v2166_v12 }
 0x7c8   :  { %3163 = vmatprep.subr.bf16.mxu0 %v3162_v13  ;;  %v3039_v14 = vpop.f32.mrb[40].mxu1 }
 0x7c9   :  { %3165 = vmatpush3.bf16.msra.mxu0 %v3162_v13  ;;  %v2409_v15 = vpop.f32.mrb[41].mxu1 }
 0x7ca   :  { %v3178_v17 = vpack.c.bf16 %v3039_v14, %v2409_v15  ;;  %3167 = vmatprep.subr.bf16.mxu0 %v3166_v4 }
 0x7cc   :  { %3020 = vmatmul.mubr.msk.f32.vlgmr.msra.gmra.mrb[14].mxu0 %vm172_vm0, %v2177_v16  ;;  %v3042_v19 = vpop.f32.mrb[42].mxu1 }
 0x7cd   :  { %3169 = vmatpush3.bf16.msra.mxu0 %v3166_v4  ;;  %v2419_v20 = vpop.f32.mrb[43].mxu1  ;;  %3030 = vmatprep.mubr.msk.f32.mxu0 %vm172_vm0, %v2085_v18 }
 0x7ce   :  { %v3182_v21 = vpack.c.bf16 %v3042_v19, %v2419_v20  ;;  %3171 = vmatprep.subr.bf16.mxu0 %v3170_v7 }
 0x7d1   :  { %3173 = vmatpush3.bf16.msra.mxu0 %v3170_v7 }
 0x7d2   :  { %3179 = vmatprep.subr.bf16.mxu0 %v3178_v17 }
 0x7d4   :  { %3031 = vmatmul.mubr.msk.f32.vlgmr.msra.gmra.mrb[14].mxu0 %vm172_vm0, %v2086_v22 }
 0x7d5   :  { %3181 = vmatpush3.bf16.msra.mxu0 %v3178_v17  ;;  %3051 = vmatprep.mubr.msk.f32.mxu0 %vm172_vm0, %v2429_v23 }
 0x7d6   :  { %3183 = vmatprep.subr.bf16.mxu0 %v3182_v21 }
 0x7d9   :  { %3185 = vmatpush3.bf16.msra.mxu0 %v3182_v21 }
 0x7dc   :  { %3052 = vmatmul.mubr.msk.f32.vlgmr.msra.gmra.mrb[14].mxu0 %vm172_vm0, %v2430_v24 }
 0x8af   :  { %v3053_v26 = vpop.f32.mrb[14].mxu0 }
 0x8b0   :  { %v2527_v28 = vadd.f32 %v3053_v26, %v2524_v25  ;;  %v2503_v29 = vpop.f32.mrb[15].mxu0 }
 0x8b1   :  { %v2526_v30 = vadd.f32 %v2519_v27, %v2503_v29 }
 0x8b2   :  { %v2529_v31 = vmax.f32 %v2527_v28, 0.0 }
 0x8b3   :  { %v2528_v32 = vmax.f32 %v2526_v30, 0.0 }
 0x8b4   :  { %2531 = vst.msk [vmem:[%s3852_s13 + $0x8] sm:$0xff] %vm172_vm0, %v2529_v31 }
 0x8b5   :  { %2530 = vst.msk [vmem:[%s3852_s13] sm:$0xff] %vm172_vm0, %v2528_v32 }
 0x8b6   :  { %2536 = vsyncpa [#allocation3], 1 }
 0x8b7   :  { %2537 = vsyncpa [#allocation5], 1 }
 0x8b8   :  { %2538 = vsyncpa [#allocation8], 1 }
 0x8b9   :  { %2539 = vsyncpa [#allocation11], 1 }
 0x8ba   :  { %2540 = vsyncpa [#allocation14], 1 }

</bundles_post_ra>
